<compile_context>
chip_gen: v7x
topology: tpu7x:2x2x1
jax: 0.10.0
libtpu: 0.0.40
codegen_flags: <defaults>
</compile_context>

<pallas_src>
import functools

import jax
import jax.numpy as jnp
from jax.experimental import pallas as pl
from jax.experimental.pallas import tpu as pltpu

EPS = 1e-5


def _flat_patch_cls_kernel(dims, *refs):
    """Fused channel-LayerNorm + 1x1-conv, channels-on-sublanes layout.

    refs layout (all f32):
      x_refs[i]   : (dims[i], tm)   input segment, channels x spatial-lanes
      gamma_ref   : (C_total, 1)    concatenated LayerNorm weights
      beta_ref    : (C_total, 1)    concatenated LayerNorm biases
      w_ref       : (K, C_total)    1x1 conv weight
      bias_ref    : (K, 1)          conv bias
      normed_refs[i]: (dims[i], tm) LayerNorm outputs (returned "orig_x")
      cls_ref     : (K, tm)         logits
    """
    n_seg = len(dims)
    x_refs = refs[:n_seg]
    gamma_ref = refs[n_seg]
    beta_ref = refs[n_seg + 1]
    w_ref = refs[n_seg + 2]
    bias_ref = refs[n_seg + 3]
    normed_refs = refs[n_seg + 4: n_seg + 4 + n_seg]
    cls_ref = refs[n_seg + 4 + n_seg]

    acc = None
    off = 0
    for i, d in enumerate(dims):           # static python loop (static sizes)
        seg = x_refs[i][...]               # (d, tm)
        g = gamma_ref[off:off + d, :]      # (d, 1)
        b = beta_ref[off:off + d, :]       # (d, 1)

        # LayerNorm over channels == reduction over the sublane axis.
        mean = jnp.mean(seg, axis=0, keepdims=True)          # (1, tm)
        diff = seg - mean
        var = jnp.mean(diff * diff, axis=0, keepdims=True)   # biased, like nn.LayerNorm
        xn = diff * jax.lax.rsqrt(var + EPS) * g + b         # (d, tm)

        # write each normalized segment directly (no concat / copies)
        normed_refs[i][...] = xn

        # 1x1 conv contribution of this segment: (K, d) @ (d, tm)
        w_seg = w_ref[:, off:off + d]
        p = jnp.dot(w_seg, xn, preferred_element_type=jnp.float32)
        acc = p if acc is None else acc + p
        off += d

    cls_ref[...] = acc + bias_ref[...]     # (K, tm) + (K, 1) broadcast


def flat_patch_classifier(x_list, gammas, betas, conv_w, conv_b, *, tm_lanes=2048):
    """x_list: list of NCHW float32 arrays, channels == dims[i].

    Returns (normed_list_NCHW, cls_NCHW) matching the PyTorch forward.
    """
    dims = tuple(int(xi.shape[1]) for xi in x_list)
    n_seg = len(dims)
    N, _, H, W = x_list[0].shape
    HW = H * W
    C_total = sum(dims)
    K = conv_w.shape[0]

    # --- glue (all free reshapes / tiny param packing, no HBM passes) -------
    x3d = [xi.reshape(N, d, HW) for xi, d in zip(x_list, dims)]   # NCHW view
    gamma = jnp.concatenate([g.reshape(-1) for g in gammas]).reshape(C_total, 1)
    beta = jnp.concatenate([b.reshape(-1) for b in betas]).reshape(C_total, 1)
    w2d = conv_w.reshape(K, C_total)
    b2d = conv_b.reshape(K, 1)

    # Lane tile: full extent if small, otherwise a large multiple of 128.
    tm = HW if HW <= tm_lanes else tm_lanes
    grid = (N, pl.cdiv(HW, tm))            # no divisibility requirement

    in_specs = (
        [pl.BlockSpec((None, d, tm), lambda n, m: (n, 0, m)) for d in dims]
        + [
            pl.BlockSpec((C_total, 1), lambda n, m: (0, 0)),
            pl.BlockSpec((C_total, 1), lambda n, m: (0, 0)),
            pl.BlockSpec((K, C_total), lambda n, m: (0, 0)),
            pl.BlockSpec((K, 1), lambda n, m: (0, 0)),
        ]
    )
    out_specs = tuple(
        [pl.BlockSpec((None, d, tm), lambda n, m: (n, 0, m)) for d in dims]
        + [pl.BlockSpec((None, K, tm), lambda n, m: (n, 0, m))]
    )
    out_shape = tuple(
        [jax.ShapeDtypeStruct((N, d, HW), jnp.float32) for d in dims]
        + [jax.ShapeDtypeStruct((N, K, HW), jnp.float32)]
    )

    # VMEM budget: double-buffered input + output blocks + tiny params.
    per_step_bytes = 4 * tm * (2 * C_total + K) + 4 * C_total * (K + 2) + 4 * K
    vmem_limit = int(min(48 << 20, max(32 << 20, 4 * per_step_bytes + (1 << 20))))

    outs = pl.pallas_call(
        functools.partial(_flat_patch_cls_kernel, dims),
        out_shape=out_shape,
        grid=grid,
        in_specs=in_specs,
        out_specs=out_specs,
        compiler_params=pltpu.CompilerParams(
            dimension_semantics=("parallel", "parallel"),
            vmem_limit_bytes=vmem_limit),
    )(*x3d, gamma, beta, w2d, b2d)

    # --- free reshapes back to NCHW -----------------------------------------
    normed_list = [outs[i].reshape(N, dims[i], H, W) for i in range(n_seg)]
    cls = outs[n_seg].reshape(N, K, H, W)
    return normed_list, cls


def _reference(x_list, gammas, betas, conv_w, conv_b):
    """Pure-JAX reference for validation."""
    normed = []
    for xi, g, b in zip(x_list, gammas, betas):
        xnhwc = jnp.transpose(xi, (0, 2, 3, 1))
        mean = jnp.mean(xnhwc, axis=-1, keepdims=True)
        var = jnp.mean((xnhwc - mean) ** 2, axis=-1, keepdims=True)
        nrm = (xnhwc - mean) / jnp.sqrt(var + EPS) * g + b
        normed.append(jnp.transpose(nrm, (0, 3, 1, 2)))
    cat = jnp.concatenate(normed, axis=1)                      # (N, C_total, H, W)
    w = conv_w.reshape(conv_w.shape[0], -1)                    # (K, C_total)
    cls = jnp.einsum('nchw,kc->nkhw', cat, w) + conv_b[None, :, None, None]
    return normed, cls


if __name__ == "__main__":
    key = jax.random.PRNGKey(0)
    dims = [4, 8]
    num_classes = 5
    N, H, W = 2, 16, 16
    C_total = sum(dims)

    k_x0, k_x1, k_w, k_b = jax.random.split(key, 4)
    x_list = [
        jax.random.normal(k_x0, (N, dims[0], H, W), jnp.float32),
        jax.random.normal(k_x1, (N, dims[1], H, W), jnp.float32),
    ]

    # deterministic parameter init (LayerNorm: ones/zeros, Conv2d: uniform)
    gammas = [jnp.ones((d,), jnp.float32) for d in dims]
    betas = [jnp.zeros((d,), jnp.float32) for d in dims]
    bound = 1.0 / (C_total ** 0.5)
    conv_w = jax.random.uniform(k_w, (num_classes, C_total, 1, 1),
                                jnp.float32, -bound, bound)
    conv_b = jax.random.uniform(k_b, (num_classes,), jnp.float32, -bound, bound)
    # TODO(synk): 'conv3x3' and 'mlp' cls_type variants not implemented; default conv1x1 only.

    normed_list, cls = flat_patch_classifier(x_list, gammas, betas, conv_w, conv_b)
    jax.block_until_ready(cls)

    ref_normed, ref_cls = _reference(x_list, gammas, betas, conv_w, conv_b)
    for a, b in zip(normed_list, ref_normed):
        assert jnp.allclose(a, b, atol=1e-4, rtol=1e-4)
    assert jnp.allclose(cls, ref_cls, atol=1e-4, rtol=1e-4)

    print("KERNEL_OK")
</pallas_src>

<mosaic_0001>
module attributes {stable_mosaic.version = 11 : i64} {
  func.func @_flat_patch_cls_kernel(%arg0: i32, %arg1: i32, %arg2: memref<1x4x256xf32, #tpu.memory_space<vmem>>, %arg3: memref<1x8x256xf32, #tpu.memory_space<vmem>>, %arg4: memref<12x1xf32, #tpu.memory_space<vmem>>, %arg5: memref<12x1xf32, #tpu.memory_space<vmem>>, %arg6: memref<5x12xf32, #tpu.memory_space<vmem>>, %arg7: memref<5x1xf32, #tpu.memory_space<vmem>>, %arg8: memref<1x4x256xf32, #tpu.memory_space<vmem>>, %arg9: memref<1x8x256xf32, #tpu.memory_space<vmem>>, %arg10: memref<1x5x256xf32, #tpu.memory_space<vmem>>) attributes {dimension_semantics = [#tpu.dimension_semantics<parallel>, #tpu.dimension_semantics<parallel>], iteration_bounds = array<i64: 2, 1>, scalar_prefetch = 0 : i64, scratch_operands = 0 : i64, tpu.core_type = #tpu.core_type<tc>, window_params = [{transform_indices = @transform_0, window_bounds = array<i64: 1, 4, 256>}, {transform_indices = @transform_1, window_bounds = array<i64: 1, 8, 256>}, {pipeline_mode = #tpu.pipeline_mode<synchronous>, transform_indices = @transform_2, window_bounds = array<i64: 12, 1>}, {pipeline_mode = #tpu.pipeline_mode<synchronous>, transform_indices = @transform_3, window_bounds = array<i64: 12, 1>}, {pipeline_mode = #tpu.pipeline_mode<synchronous>, transform_indices = @transform_4, window_bounds = array<i64: 5, 12>}, {pipeline_mode = #tpu.pipeline_mode<synchronous>, transform_indices = @transform_5, window_bounds = array<i64: 5, 1>}, {transform_indices = @transform_6, window_bounds = array<i64: 1, 4, 256>}, {transform_indices = @transform_7, window_bounds = array<i64: 1, 8, 256>}, {transform_indices = @transform_8, window_bounds = array<i64: 1, 5, 256>}]} {
    %c0 = arith.constant 0 : index
    %c0_0 = arith.constant 0 : index
    %c0_1 = arith.constant 0 : index
    %0 = vector.load %arg2[%c0, %c0_0, %c0_1] : memref<1x4x256xf32, #tpu.memory_space<vmem>>, vector<1x4x256xf32>
    %1 = vector.shape_cast %0 : vector<1x4x256xf32> to vector<4x256xf32>
    %c0_2 = arith.constant 0 : index
    %c0_3 = arith.constant 0 : index
    %2 = vector.load %arg4[%c0_2, %c0_3] : memref<12x1xf32, #tpu.memory_space<vmem>>, vector<4x1xf32>
    %c0_4 = arith.constant 0 : index
    %c0_5 = arith.constant 0 : index
    %3 = vector.load %arg5[%c0_4, %c0_5] : memref<12x1xf32, #tpu.memory_space<vmem>>, vector<4x1xf32>
    %cst = arith.constant dense<0.000000e+00> : vector<256xf32>
    %4 = vector.multi_reduction <add>, %1, %cst [0] : vector<4x256xf32> to vector<256xf32>
    %5 = vector.shape_cast %4 : vector<256xf32> to vector<1x256xf32>
    %cst_6 = arith.constant 4.000000e+00 : f32
    %6 = vector.broadcast %cst_6 : f32 to vector<1x256xf32>
    %7 = arith.divf %5, %6 : vector<1x256xf32>
    %8 = vector.broadcast %7 : vector<1x256xf32> to vector<4x256xf32>
    %9 = arith.subf %1, %8 : vector<4x256xf32>
    %10 = arith.mulf %9, %9 : vector<4x256xf32>
    %cst_7 = arith.constant dense<0.000000e+00> : vector<256xf32>
    %11 = vector.multi_reduction <add>, %10, %cst_7 [0] : vector<4x256xf32> to vector<256xf32>
    %12 = vector.shape_cast %11 : vector<256xf32> to vector<1x256xf32>
    %cst_8 = arith.constant 4.000000e+00 : f32
    %13 = vector.broadcast %cst_8 : f32 to vector<1x256xf32>
    %14 = arith.divf %12, %13 : vector<1x256xf32>
    %cst_9 = arith.constant 9.99999974E-6 : f32
    %15 = vector.broadcast %cst_9 : f32 to vector<1x256xf32>
    %16 = arith.addf %14, %15 : vector<1x256xf32>
    %17 = math.rsqrt %16 : vector<1x256xf32>
    %18 = vector.broadcast %17 : vector<1x256xf32> to vector<4x256xf32>
    %19 = arith.mulf %9, %18 : vector<4x256xf32>
    %20 = vector.broadcast %2 : vector<4x1xf32> to vector<4x256xf32>
    %21 = arith.mulf %19, %20 : vector<4x256xf32>
    %22 = vector.broadcast %3 : vector<4x1xf32> to vector<4x256xf32>
    %23 = arith.addf %21, %22 : vector<4x256xf32>
    %c0_10 = arith.constant 0 : index
    %c0_11 = arith.constant 0 : index
    %c0_12 = arith.constant 0 : index
    %24 = vector.load %arg8[%c0_10, %c0_11, %c0_12] : memref<1x4x256xf32, #tpu.memory_space<vmem>>, vector<1x4x256xf32>
    %25 = vector.shape_cast %24 : vector<1x4x256xf32> to vector<4x256xf32>
    %26 = vector.shape_cast %23 : vector<4x256xf32> to vector<1x4x256xf32>
    tpu.vector_store %arg8[%c0_10, %c0_11, %c0_12], %26 {strides = array<i32>} : memref<1x4x256xf32, #tpu.memory_space<vmem>>, vector<1x4x256xf32>,
    %c0_13 = arith.constant 0 : index
    %c0_14 = arith.constant 0 : index
    %27 = vector.load %arg6[%c0_13, %c0_14] : memref<5x12xf32, #tpu.memory_space<vmem>>, vector<5x4xf32>
    %cst_15 = arith.constant dense<0.000000e+00> : vector<5x256xf32>
    %28 = tpu.matmul %27, %23, %cst_15 {dimension_numbers = #tpu.dot_dimension_numbers<[1], [0], [0], [1], [0, 0, 1, 1], [], []>} : vector<5x4xf32>, vector<4x256xf32>, vector<5x256xf32> -> vector<5x256xf32>
    %c0_16 = arith.constant 0 : index
    %c0_17 = arith.constant 0 : index
    %c0_18 = arith.constant 0 : index
    %29 = vector.load %arg3[%c0_16, %c0_17, %c0_18] : memref<1x8x256xf32, #tpu.memory_space<vmem>>, vector<1x8x256xf32>
    %30 = vector.shape_cast %29 : vector<1x8x256xf32> to vector<8x256xf32>
    %c4 = arith.constant 4 : index
    %c0_19 = arith.constant 0 : index
    %31 = vector.load %arg4[%c4, %c0_19] : memref<12x1xf32, #tpu.memory_space<vmem>>, vector<8x1xf32>
    %c4_20 = arith.constant 4 : index
    %c0_21 = arith.constant 0 : index
    %32 = vector.load %arg5[%c4_20, %c0_21] : memref<12x1xf32, #tpu.memory_space<vmem>>, vector<8x1xf32>
    %cst_22 = arith.constant dense<0.000000e+00> : vector<256xf32>
    %33 = vector.multi_reduction <add>, %30, %cst_22 [0] : vector<8x256xf32> to vector<256xf32>
    %34 = vector.shape_cast %33 : vector<256xf32> to vector<1x256xf32>
    %cst_23 = arith.constant 8.000000e+00 : f32
    %35 = vector.broadcast %cst_23 : f32 to vector<1x256xf32>
    %36 = arith.divf %34, %35 : vector<1x256xf32>
    %37 = vector.broadcast %36 : vector<1x256xf32> to vector<8x256xf32>
    %38 = arith.subf %30, %37 : vector<8x256xf32>
    %39 = arith.mulf %38, %38 : vector<8x256xf32>
    %cst_24 = arith.constant dense<0.000000e+00> : vector<256xf32>
    %40 = vector.multi_reduction <add>, %39, %cst_24 [0] : vector<8x256xf32> to vector<256xf32>
    %41 = vector.shape_cast %40 : vector<256xf32> to vector<1x256xf32>
    %cst_25 = arith.constant 8.000000e+00 : f32
    %42 = vector.broadcast %cst_25 : f32 to vector<1x256xf32>
    %43 = arith.divf %41, %42 : vector<1x256xf32>
    %cst_26 = arith.constant 9.99999974E-6 : f32
    %44 = vector.broadcast %cst_26 : f32 to vector<1x256xf32>
    %45 = arith.addf %43, %44 : vector<1x256xf32>
    %46 = math.rsqrt %45 : vector<1x256xf32>
    %47 = vector.broadcast %46 : vector<1x256xf32> to vector<8x256xf32>
    %48 = arith.mulf %38, %47 : vector<8x256xf32>
    %49 = vector.broadcast %31 : vector<8x1xf32> to vector<8x256xf32>
    %50 = arith.mulf %48, %49 : vector<8x256xf32>
    %51 = vector.broadcast %32 : vector<8x1xf32> to vector<8x256xf32>
    %52 = arith.addf %50, %51 : vector<8x256xf32>
    %c0_27 = arith.constant 0 : index
    %c0_28 = arith.constant 0 : index
    %c0_29 = arith.constant 0 : index
    %53 = vector.load %arg9[%c0_27, %c0_28, %c0_29] : memref<1x8x256xf32, #tpu.memory_space<vmem>>, vector<1x8x256xf32>
    %54 = vector.shape_cast %53 : vector<1x8x256xf32> to vector<8x256xf32>
    %55 = vector.shape_cast %52 : vector<8x256xf32> to vector<1x8x256xf32>
    tpu.vector_store %arg9[%c0_27, %c0_28, %c0_29], %55 {strides = array<i32>} : memref<1x8x256xf32, #tpu.memory_space<vmem>>, vector<1x8x256xf32>,
    %c0_30 = arith.constant 0 : index
    %c4_31 = arith.constant 4 : index
    %56 = vector.load %arg6[%c0_30, %c4_31] : memref<5x12xf32, #tpu.memory_space<vmem>>, vector<5x8xf32>
    %cst_32 = arith.constant dense<0.000000e+00> : vector<5x256xf32>
    %57 = tpu.matmul %56, %52, %cst_32 {dimension_numbers = #tpu.dot_dimension_numbers<[1], [0], [0], [1], [0, 0, 1, 1], [], []>} : vector<5x8xf32>, vector<8x256xf32>, vector<5x256xf32> -> vector<5x256xf32>
    %58 = arith.addf %28, %57 : vector<5x256xf32>
    %c0_33 = arith.constant 0 : index
    %c0_34 = arith.constant 0 : index
    %59 = vector.load %arg7[%c0_33, %c0_34] : memref<5x1xf32, #tpu.memory_space<vmem>>, vector<5x1xf32>
    %60 = vector.broadcast %59 : vector<5x1xf32> to vector<5x256xf32>
    %61 = arith.addf %58, %60 : vector<5x256xf32>
    %c0_35 = arith.constant 0 : index
    %c0_36 = arith.constant 0 : index
    %c0_37 = arith.constant 0 : index
    %62 = vector.load %arg10[%c0_35, %c0_36, %c0_37] : memref<1x5x256xf32, #tpu.memory_space<vmem>>, vector<1x5x256xf32>
    %63 = vector.shape_cast %62 : vector<1x5x256xf32> to vector<5x256xf32>
    %64 = vector.shape_cast %61 : vector<5x256xf32> to vector<1x5x256xf32>
    tpu.vector_store %arg10[%c0_35, %c0_36, %c0_37], %64 {strides = array<i32>} : memref<1x5x256xf32, #tpu.memory_space<vmem>>, vector<1x5x256xf32>,
    return
  }
  func.func @transform_0(%arg0: i32, %arg1: i32) -> (i32, i32, i32) {
    %c0_i32 = arith.constant 0 : i32
    %c0_i32_0 = arith.constant 0 : i32
    return %arg0, %c0_i32, %arg1 : i32, i32, i32
  }
  func.func @transform_1(%arg0: i32, %arg1: i32) -> (i32, i32, i32) {
    %c0_i32 = arith.constant 0 : i32
    %c0_i32_0 = arith.constant 0 : i32
    return %arg0, %c0_i32, %arg1 : i32, i32, i32
  }
  func.func @transform_2(%arg0: i32, %arg1: i32) -> (i32, i32) {
    %c0_i32 = arith.constant 0 : i32
    %c0_i32_0 = arith.constant 0 : i32
    %c0_i32_1 = arith.constant 0 : i32
    return %c0_i32, %c0_i32_0 : i32, i32
  }
  func.func @transform_3(%arg0: i32, %arg1: i32) -> (i32, i32) {
    %c0_i32 = arith.constant 0 : i32
    %c0_i32_0 = arith.constant 0 : i32
    %c0_i32_1 = arith.constant 0 : i32
    return %c0_i32, %c0_i32_0 : i32, i32
  }
  func.func @transform_4(%arg0: i32, %arg1: i32) -> (i32, i32) {
    %c0_i32 = arith.constant 0 : i32
    %c0_i32_0 = arith.constant 0 : i32
    %c0_i32_1 = arith.constant 0 : i32
    return %c0_i32, %c0_i32_0 : i32, i32
  }
  func.func @transform_5(%arg0: i32, %arg1: i32) -> (i32, i32) {
    %c0_i32 = arith.constant 0 : i32
    %c0_i32_0 = arith.constant 0 : i32
    %c0_i32_1 = arith.constant 0 : i32
    return %c0_i32, %c0_i32_0 : i32, i32
  }
  func.func @transform_6(%arg0: i32, %arg1: i32) -> (i32, i32, i32) {
    %c0_i32 = arith.constant 0 : i32
    %c0_i32_0 = arith.constant 0 : i32
    return %arg0, %c0_i32, %arg1 : i32, i32, i32
  }
  func.func @transform_7(%arg0: i32, %arg1: i32) -> (i32, i32, i32) {
    %c0_i32 = arith.constant 0 : i32
    %c0_i32_0 = arith.constant 0 : i32
    return %arg0, %c0_i32, %arg1 : i32, i32, i32
  }
  func.func @transform_8(%arg0: i32, %arg1: i32) -> (i32, i32, i32) {
    %c0_i32 = arith.constant 0 : i32
    %c0_i32_0 = arith.constant 0 : i32
    return %arg0, %c0_i32, %arg1 : i32, i32, i32
  }
}

</mosaic_0001>

<bundles_post_ra>
// kernel: tpu_custom_call.1
= control target key start
LH: loop header
LB: loop body
LE: loop exit
PB: predicated region body
PF: predicated region fallthrough
CT: control target
= control target key end

     0   :  { %s1515_s0 = inlined_call_operand.hbm [shape: f32[2,4,256], index: 0, kind: input, shape index: {}]   ;;  %s1516_s1 = inlined_call_operand.vmem [shape: f32[2,8,256], index: 1, kind: input, shape index: {}]   ;;  %s1517_s2 = inlined_call_operand.vmem [shape: f32[12,1], index: 2, kind: input, shape index: {}]   ;;  %s1518_s3 = inlined_call_operand.vmem [shape: f32[12,1], index: 3, kind: input, shape index: {}]   ;;  %s1519_s4 = inlined_call_operand.vmem [shape: f32[5,12], index: 4, kind: input, shape index: {}]   ;;  %s1520_s5 = inlined_call_operand.vmem [shape: f32[5,1], index: 5, kind: input, shape index: {}]   ;;  %s1521_s6 = inlined_call_operand.hbm [shape: f32[2,4,256], index: 6, kind: output, shape index: {0}]   ;;  %s1522_s7 = inlined_call_operand.hbm [shape: f32[2,8,256], index: 7, kind: output, shape index: {1}]   ;;  %s1523_s8 = inlined_call_operand.vmem [shape: f32[2,5,256], index: 8, kind: output, shape index: {2}]  }
   0x1   :  { %1526 = sst [smem:[#allocation11_spill]] %s1515_s0 }
   0x2   :  { %1527 = sst [smem:[#allocation12_spill]] %s1516_s1 }
   0x3   :  { %1528 = sst [smem:[#allocation13_spill]] %s1517_s2 }
   0x4   :  { %1529 = sst [smem:[#allocation14_spill]] %s1518_s3 }
   0x5   :  { %14 = vsyncpa [#allocation3], 0 }
   0x6   :  { %16 = vsyncpa [#allocation3 + $0x1], 0 }
   0x7   :  { %17 = vsyncpa [#allocation4], 0 }
   0x8   :  { %19 = vsyncpa [#allocation4 + $0x1], 0 }
   0x9   :  { %20 = vsyncpa [#allocation7], 0 }
   0xa   :  { %22 = vsyncpa [#allocation7 + $0x1], 0  ;;  %s1268_s27 = smov 0   ;;  %s1270_s28 = smov 0  }
   0xb   :  { %s1272_s29 = smov 0   ;;  %s1274_s30 = smov 0  }
   0xc   :  { %s1276_s9 = smov 0   ;;  %s1278_s10 = smov 0  }
   0xd LB: > { %s954_s11 = sadd.s32 4294967295, %s1214_s10   ;;  %s955_s12 = sadd.s32 4294967294, %s1214_s10   ;;  %s1214_s10 = sphi %s1278_s10, %s28_s10   ;;  %s1210_s9 = sphi %s1276_s9, %s1549_s9   ;;  %s1206_s30 = sphi %s1274_s30, %s1548_s30   ;;  %s1202_s29 = sphi %s1272_s29, %s1547_s29   ;;  %s1198_s28 = sphi %s1270_s28, %s1546_s28   ;;  %s1194_s27 = sphi %s1268_s27, %s1545_s27  }
   0xe   : > { %s40_s13 = sadd.s32 1, %s1210_s9  ;;  %s49_s14 = sadd.s32 1, %s1202_s29 }
   0xf   : > { %p42_p0 = scmp.ge.s32.totalorder %s40_s13, 2  ;;  %p56_p1 = scmp.ne.s32.totalorder %s1202_s29, %s1198_s28 }
  0x10   : > { %p57_p2 = scmp.eq.s32.totalorder %s1214_s10, 0  ;;  %p62_p3 = scmp.ne.s32.totalorder %s1198_s28, %s1194_s27 }
  0x11   : > { %s1551_s13 = smov (%p42_p0, %s40_s13), 0  ;;  %p63_p5 = scmp.eq.s32.totalorder %s954_s11, 0 }
  0x12   : > { %p1309_p4 = por %p57_p2, %p56_p1  ;;  %s44_s16 = ssub.s32 %s1210_s9, %s1551_s13 }
  0x13   : > { %p200_p6 = scmp.eq.s32.totalorder %s954_s11, 1  ;;  %p47_p7 = scmp.eq.s32.totalorder %s44_s16, 0 }
  0x14   : > { %p1315_p8 = por %p63_p5, %p62_p3  ;;  %p206_p10 = scmp.eq.s32.totalorder %s955_s12, 1 }
  0x15   : > { %p1319_p9 = por %p200_p6, %p56_p1  ;;  %p1005_p13 = scmp.lt.s32.totalorder %s1214_s10, 2 }
  0x16   : > { %s1324_s19 = scalar_select %p47_p7, %s1202_s29, %s49_s14  }
  0x17   : > { %s1532_s18 = scalar_select %p1319_p9, 1, 0 }
  0x18   : > { %p1326_p11 = por %p206_p10, %p62_p3  ;;  %s294_s21 = sand.u32 1, %s1202_s29  }
  0x19   : > { %s958_s22 = sshll.u32 %s294_s21, 3  ;;  %s981_s23 = sshll.u32 %s1210_s9, 7 }
  0x1a   : > { %s1533_s20 = scalar_select %p1326_p11, 1, 0 }
  0x1b   : > { %s1534_s0 = sld [smem:[#allocation11_spill]]  ;;  %s298_s11 = scalar_lea.vmem [#allocation2], %s958_s22 }
  0x1c   : > { %s308_s12 = sshll.u32 %s298_s11, 4  ;;  %p1343_p0 = pnand %p1005_p13, %p1309_p4  ;;  %s1339_s12 = int_to_ptr.vmem [resolvable:$true] %s308_s12 }
  0x1d   : > { %s295_s16 = scalar_lea.sflag [#allocation3], %s294_s21 }
  0x1e   : > { %p1072_p5 = pneg %p1343_p0 }
  0x21   : > { %s1337_s26 = scalar_lea.hbm %s1534_s0, %s981_s23  ;;  %s1075_s15 = scalar_lea.hbm %s1534_s0, 256 }
  0x22   : > { %s1070_s23 = scalar_lea.hbm %s1337_s26, 128  ;;  %p1076_p4 = scmp.lt.u32.totalorder %s1337_s26, %s1534_s0 }
  0x23   : > { %p1071_p3 = scmp.ne.s32.totalorder %s1337_s26, %s1070_s23  ;;  %p1077_p10 = scmp.lt.u32.totalorder %s1075_s15, %s1070_s23 }
  0x24   : > { %p1079_p12 = scmp.lt.u32.totalorder %s1070_s23, %s1337_s26 }
  0x25   : > { %p1073_p6 = pnand %p1072_p5, %p1071_p3  ;;  %p1078_p13 = por %p1077_p10, %p1076_p4 }
  0x27   : > { %p1074_p7 = pneg %p1073_p6  ;;  %p1080_p1 = por %p1079_p12, %p1078_p13 }
  0x29   : > { %p1081_p2 = pnand %p1080_p1, %p1074_p7 }
  0x2b   : > { %1084 = shalt.err (!%p1081_p2)
}
  0x2c   : > { %s1085_s21 = scalar_lea.vmem %s1339_s12, 128  ;;  %s1216_s22 = smov [#allocation2]  }
  0x2d   : > { %p1086_p3 = scmp.ne.s32.totalorder %s1339_s12, %s1085_s21  ;;  %s1090_s24 = sshll.u32 %s1216_s22, 4  ;;  %s1091_s24 = int_to_ptr.vmem [resolvable:$false] %s1090_s24 }
  0x2e   : > { %s1092_s25 = scalar_lea.vmem %s1091_s24, 256  ;;  %p1093_p9 = scmp.lt.s32.totalorder %s1339_s12, %s1091_s24 }
  0x2f   : > { %p1088_p6 = pnand %p1086_p3, %p1072_p5  ;;  %p1094_p4 = scmp.lt.s32.totalorder %s1092_s25, %s1085_s21 }
  0x31   : > { %p1089_p11 = pneg %p1088_p6  ;;  %p1095_p10 = por %p1094_p4, %p1093_p9 }
  0x33   : > { %p1096_p12 = pnand %p1095_p10, %p1089_p11 }
  0x35   : > { %1099 = shalt.err (!%p1096_p12)
}
  0x36   : > { %997 = dma.hbm_to_vmem [thread:$0]  (!%p1343_p0), %s1337_s26, 128, %s1339_s12, %s295_s16  }
  0x37   : > { %p1536_p1 = scmp.lt.s32.totalorder %s1214_s10, 3  ;;  %p1537_p2 = scmp.ge.s32.totalorder %s1214_s10, 1 }
  0x39   : > { %p327_p5 = pnand %p1537_p2, %p1536_p1 }
  0x3a   : > { %s1379_s23 = sand.u32 (!%p327_p5), 1, %s1198_s28  }
  0x3b   : > { %330 = sbr.rel (%p327_p5) target bundleno = 432 (0x1b0), region = 44  ;;  %s962_s15 = sshll.u32 (!%p327_p5), %s1379_s23, 3 }
  0x3c   : > { %s333_s11 = scalar_lea.sflag (!%p327_p5), [#allocation3], %s1379_s23  ;;  %s336_s14 = scalar_lea.vmem (!%p327_p5), [#allocation2], %s962_s15 }
  0x42   : > { %1181 = dma.done.wait (%p1315_p8), %s333_s11, 128  }
  0x43   : > { %1183 = vsyncadd (%p1315_p8), %s333_s11, 4294967168  ;;  %v1217_v0 = vmov 0   ;;  %s1538_s2 = sld [smem:[#allocation13_spill]]  ;;  %s1539_s3 = sld [smem:[#allocation14_spill]]  ;;  %v719_v5 = vld [vmem:[%s1520_s5] sm:$0x1f] }
  0x44   : > { %1060 = vset.pattern.permute.xlu1 %v1217_v0  ;;  %1059 = vset.pattern.permute.xlu0 %v1217_v0  ;;  %v560_v6 = vld [vmem:[%s1519_s4] sm:$0x1f]  ;;  %s1218_s21 = smov 124   ;;  %v1219_v7 = vmov 0.0   ;;  %p394_p8 = scmp.lt.s32.totalorder %s1206_s30, 1  ;;  %vm421_vm0 = vcmask 1043456  }
  0x45   : > { %631 = vmatprep.mubr.f32.mxu1 %v1219_v7  ;;  %712 = vmatprep.mubr.f32.mxu0 %v1219_v7  ;;  %v415_v8 = vld [vmem:[%s336_s14] sm:$0xff]  ;;  %s1540_s1 = sld [smem:[#allocation12_spill]]  ;;  %s964_s14 = sshll.u32 %s1379_s23, 4  ;;  %vm564_vm1 = vcmask 64512   ;;  %vm640_vm2 = vcmask 31744  }
  0x46   : > { %v419_v9 = vcombine.high %v415_v8, %v415_v8  ;;  %s1409_s22 = scalar_select %p394_p8, %s1206_s30, 1  ;;  %v422_v10 = vsel %vm421_vm0, %v415_v8, 0.0 }
  0x47   : > { %v423_v12 = vrot.slane %v422_v10, 4  ;;  %s1427_s26 = scalar_lea.vmem [#allocation6], %s964_s14  ;;  %s373_s12 = scalar_lea.vmem [#allocation5], %s962_s15 }
  0x48   : > { %v429_v11 = vsel %vm421_vm0, %v419_v9, 0.0  ;;  %s1525_s24 = sshll.u32 %s1409_s22, 4  ;;  %s984_s17 = sshll.u32 %s1206_s30, 7 }
  0x49   : > { %v503_v1 = vld [vmem:[%s1538_s2 + $0x4] sm:$0xff]  ;;  %v416_v2 = vld [vmem:[%s1538_s2] sm:$0xf]  ;;  %v430_v13 = vrot.slane %v429_v11, 4  ;;  %v424_v14 = vadd.f32 %v423_v12, %v422_v10  ;;  %s760_s25 = sshll.u32 %s373_s12, 4  ;;  %s730_s15 = scalar_lea.sflag [#allocation4], %s1379_s23  ;;  %s761_s25 = int_to_ptr.vmem [resolvable:$true] %s760_s25 }
  0x4a   : > { %546 = vperm.xlu1 %1060, %v503_v1   ;;  %475 = vperm.xlu0 %1059, %v416_v2   ;;  %v504_v3 = vld [vmem:[%s1539_s3 + $0x4] sm:$0xff]  ;;  %v417_v4 = vld [vmem:[%s1539_s3] sm:$0xf]  ;;  %s1100_s0 = scalar_lea.vmem %s761_s25, 128  ;;  %p1541_p11 = scmp.ne.s32.totalorder %s1532_s18, 0 }
  0x4b   : > { %s401_s11 = scalar_lea.vmem %s1540_s1, %s1525_s24  ;;  %v431_v15 = vadd.f32 %v430_v13, %v429_v11  ;;  %v425_v19 = vrot.slane %v424_v14, 2  ;;  %s1442_s24 = scalar_lea.hbm %s1521_s6, %s984_s17 }
  0x4c   : > { %v501_v16 = vld [vmem:[%s401_s11] sm:$0xff]  ;;  %v502_v17 = vld [vmem:[%s401_s11 + $0x8] sm:$0xff]  ;;  %p1101_p9 = scmp.ne.s32.totalorder %s761_s25, %s1100_s0  ;;  %s1221_s16 = smov [#allocation5]  }
  0x4d   : > { %v505_v18 = vrot.slane %v501_v16, 4  ;;  %v432_v20 = vrot.slane %v431_v15, 2  ;;  %v511_v21 = vrot.slane %v502_v17, 4  ;;  %v426_v23 = vadd.f32 %v425_v19, %v424_v14 }
  0x4e   : > { %553 = vperm.xlu1 %1060, %v504_v3   ;;  %488 = vperm.xlu0 %1059, %v417_v4   ;;  %p1102_p0 = pnand %p1101_p9, %p1541_p11 }
  0x4f   : > { %v506_v22 = vadd.f32 %v505_v18, %v501_v16  ;;  %v433_v24 = vadd.f32 %v432_v20, %v431_v15  ;;  %v512_v25 = vadd.f32 %v511_v21, %v502_v17  ;;  %v427_v27 = vrot.slane %v426_v23, 1 }
  0x50   : > { %v1220_v20 = vmov 839922192   ;;  %p1103_p7 = pneg %p1102_p0 }
  0x51   : > { %v507_v26 = vrot.slane %v506_v22, 2  ;;  %v434_v28 = vrot.slane %v433_v24, 1  ;;  %v513_v29 = vrot.slane %v512_v25, 2  ;;  %v428_v31 = vadd.f32 %v427_v27, %v426_v23 }
  0x52   : > { %722 = vperm.xlu1 %1060, %v719_v5   ;;  %562 = vrot.lane.b32.xlu0 %v560_v6, %s1218_s21  ;;  %v478_v21 = vunpack.c.l.s4 %v1220_v20  ;;  %s1104_s21 = sshll.u32 %s1221_s16, 4  ;;  %s1105_s21 = int_to_ptr.vmem [resolvable:$false] %s1104_s21 }
  0x53   : > { %v508_v30 = vadd.f32 %v507_v26, %v506_v22  ;;  %v435_v32 = vadd.f32 %v434_v28, %v433_v24  ;;  %v514_v33 = vadd.f32 %v513_v29, %v512_v25  ;;  %v437_v35 = vmul.f32 0.25, %v428_v31  ;;  %s1106_s1 = scalar_lea.vmem %s1105_s21, 256  ;;  %p1107_p13 = scmp.lt.s32.totalorder %s761_s25, %s1105_s21 }
  0x54   : > { %v480_v22 = vlaneseq  ;;  %v479_v26 = vunpack.c.0.s8 %v478_v21  ;;  %p1108_p3 = scmp.lt.s32.totalorder %s1106_s1, %s1100_s0 }
  0x55   : > { %v509_v34 = vrot.slane %v508_v30, 1  ;;  %v438_v36 = vmul.f32 0.25, %v435_v32  ;;  %v515_v37 = vrot.slane %v514_v33, 1 }
  0x56   : > { %v481_v27 = vshrl.u32 %v480_v22, 7  ;;  %p1109_p6 = por %p1108_p3, %p1107_p13 }
  0x57   : > { %v510_v38 = vadd.f32 %v509_v34, %v508_v30  ;;  %v441_v39 = vcombine.low %v437_v35, %v438_v36  ;;  %v516_v40 = vadd.f32 %v515_v37, %v514_v33 }
  0x58   : > { %v482_v31 = vsub.s32 %v479_v26, %v481_v27  ;;  %p1110_p4 = pnand %p1109_p6, %p1103_p7 }
  0x59   : > { %v518_v41 = vmul.f32 0.125, %v510_v38  ;;  %v1419_v42 = vsub.f32 %v415_v8, %v441_v39  ;;  %v519_v43 = vmul.f32 0.125, %v516_v40 }
  0x5b   : > { %v520_v44 = vsub.f32 %v501_v16, %v518_v41  ;;  %v444_v45 = vmul.f32 %v1419_v42, %v1419_v42  ;;  %v521_v46 = vsub.f32 %v502_v17, %v519_v43 }
  0x5d   : > { %v522_v47 = vmul.f32 %v520_v44, %v520_v44  ;;  %v446_v48 = vcombine.high %v444_v45, %v444_v45  ;;  %v523_v49 = vmul.f32 %v521_v46, %v521_v46  ;;  %v448_v50 = vsel %vm421_vm0, %v444_v45, 0.0 }
  0x5e   : > { %v449_v54 = vrot.slane %v448_v50, 4 }
  0x5f   : > { %v524_v51 = vrot.slane %v522_v47, 4  ;;  %v455_v52 = vsel %vm421_vm0, %v446_v48, 0.0  ;;  %v530_v53 = vrot.slane %v523_v49, 4  ;;  %v500_v48 = vld [vmem:[%s1519_s4] sm:$0x1f] }
  0x60   : > { %v456_v55 = vrot.slane %v455_v52, 4  ;;  %v450_v58 = vadd.f32 %v449_v54, %v448_v50 }
  0x61   : > { %v525_v56 = vadd.f32 %v524_v51, %v522_v47  ;;  %v531_v57 = vadd.f32 %v530_v53, %v523_v49 }
  0x62   : > { %v457_v59 = vadd.f32 %v456_v55, %v455_v52  ;;  %v451_v62 = vrot.slane %v450_v58, 2 }
  0x63   : > { %v526_v60 = vrot.slane %v525_v56, 2  ;;  %v532_v61 = vrot.slane %v531_v57, 2 }
  0x64   : > { %v458_v63 = vrot.slane %v457_v59, 2  ;;  %v452_v2 = vadd.f32 %v451_v62, %v450_v58 }
  0x65   : > { %v527_v0 = vadd.f32 %v526_v60, %v525_v56  ;;  %v533_v1 = vadd.f32 %v532_v61, %v531_v57 }
  0x66   : > { %v459_v3 = vadd.f32 %v458_v63, %v457_v59  ;;  %v453_v6 = vrot.slane %v452_v2, 1 }
  0x67   : > { %v528_v4 = vrot.slane %v527_v0, 1  ;;  %v534_v5 = vrot.slane %v533_v1, 1 }
  0x68   : > { %v460_v7 = vrot.slane %v459_v3, 1  ;;  %v454_v10 = vadd.f32 %v453_v6, %v452_v2 }
  0x69   : > { %v529_v8 = vadd.f32 %v528_v4, %v527_v0  ;;  %v535_v9 = vadd.f32 %v534_v5, %v533_v1 }
  0x6a   : > { %v461_v11 = vadd.f32 %v460_v7, %v459_v3  ;;  %v462_v14 = vmul.f32 0.25, %v454_v10 }
  0x6b   : > { %v536_v12 = vmul.f32 0.125, %v529_v8  ;;  %v537_v13 = vmul.f32 0.125, %v535_v9 }
  0x6c   : > { %v463_v15 = vmul.f32 0.25, %v461_v11  ;;  %v464_v18 = vadd.f32 1e-05, %v462_v14 }
  0x6d   : > { %v538_v16 = vadd.f32 1e-05, %v536_v12  ;;  %v539_v17 = vadd.f32 1e-05, %v537_v13 }
  0x6e   : > { %v465_v19 = vadd.f32 1e-05, %v463_v15 }
  0x6f   : > { %1062 = vrsqrt.f32 %v538_v16 }
  0x70   : > { %1064 = vrsqrt.f32 %v539_v17 }
  0x71   : > { %1066 = vrsqrt.f32 %v464_v18 }
  0x72   : > { %1068 = vrsqrt.f32 %v465_v19 }
  0x79   : > { %v1063_v23 = vpop.eup %1062 }
  0x7a   : > { %v1065_v24 = vpop.eup %1064  ;;  %v542_v29 = vmul.f32 %v1063_v23, %v520_v44 }
  0x7b   : > { %v1067_v25 = vpop.eup %1066  ;;  %v543_v30 = vmul.f32 %v1065_v24, %v521_v46 }
  0x7c   : > { %v1069_v28 = vpop.eup %1068 }
  0x7d   : > { %v470_v32 = vcombine.low %v1067_v25, %v1069_v28 }
  0x7f   : > { %v472_v37 = vmul.f32 %v470_v32, %v1419_v42 }
  0xc9   : > { %v547_v33 = vpop.permute.xlu1 %546  ;;  %v476_v34 = vpop.permute.xlu0 %475 }
  0xca   : > { %v549_v35 = vmul.f32 %v547_v33, %v542_v29  ;;  %v550_v36 = vmul.f32 %v547_v33, %v543_v30  ;;  %v483_v38 = vrot.slane %v476_v34, %v482_v31 }
  0xcc   : > { %v485_v41 = vmul.f32 %v483_v38, %v472_v37 }
  0xcd   : > { %v554_v39 = vpop.permute.xlu1 %553  ;;  %v489_v40 = vpop.permute.xlu0 %488 }
  0xce   : > { %v496_v43 = vrot.slane %v489_v40, %v482_v31  ;;  %v557_v45 = vadd.f32 %v554_v39, %v550_v36  ;;  %v556_v47 = vadd.f32 %v554_v39, %v549_v35 }
  0xd0   : > { %v498_v44 = vadd.f32 %v496_v43, %v485_v41  ;;  %559 = vst [vmem:[%s1427_s26 + $0x8] sm:$0xff] %v557_v45  ;;  %567 = vmatprep.subr.mxu1 %v557_v45  ;;  %558 = vst [vmem:[%s1427_s26] sm:$0xff] %v556_v47 }
  0xd1   : > { %568 = vmatpush1.msra.mxu1 %v556_v47  ;;  %v563_v42 = vpop.permute.xlu0 %562 }
  0xd2   : > { %v639_v46 = vcombine.high %v498_v44, %v498_v44  ;;  %969 = vmatmul.mubr.msk.f32.vlgmr.msra.gmra.mrb[0].mxu1 %vm564_vm1, %v563_v42  ;;  %499 = vst [vmem:[%s373_s12] sm:$0xff] %v498_v44 }
  0xd4   : > { %970 = vmatprep.subr.msk.mxu0 %vm421_vm0, %v639_v46 }
  0xd5   : > { %971 = vmatpush1.msk.msra.mxu0 %vm421_vm0, %v498_v44 }
  0xd6   : > { %972 = vmatmul.mubr.msk.f32.vlgmr.msra.gmra.mrb[0].mxu0 %vm640_vm2, %v500_v48 }
  0xd7   : > { %1113 = shalt.err (!%p1110_p4)
}
  0xd8   : > { %s1114_s12 = scalar_lea.hbm %s1442_s24, 128  ;;  %s1118_s14 = scalar_lea.hbm %s1521_s6, 256 }
  0xd9   : > { %p1115_p10 = scmp.ne.s32.totalorder %s1442_s24, %s1114_s12  ;;  %p1119_p2 = scmp.lt.u32.totalorder %s1442_s24, %s1521_s6 }
  0xda   : > { %p1120_p5 = scmp.lt.u32.totalorder %s1118_s14, %s1114_s12  ;;  %p1122_p9 = scmp.lt.u32.totalorder %s1114_s12, %s1442_s24 }
  0xdb   : > { %p1116_p12 = pnand %p1115_p10, %p1541_p11 }
  0xdc   : > { %p1121_p8 = por %p1120_p5, %p1119_p2 }
  0xdd   : > { %p1117_p1 = pneg %p1116_p12 }
  0xde   : > { %p1123_p0 = por %p1122_p9, %p1121_p8 }
  0xe0   : > { %p1124_p7 = pnand %p1123_p0, %p1117_p1 }
  0xe2   : > { %1127 = shalt.err (!%p1124_p7)
}
  0xe3   : > { %990 = dma.vmem_to_hbm [thread:$0]  (%p1541_p11), %s761_s25, 128, %s1442_s24, %s730_s15  }
  0xe4   : > { %s985_s0 = sshll.u32 %s1206_s30, 8  ;;  %s776_s1 = sshll.u32 %s1427_s26, 4  ;;  %s777_s1 = int_to_ptr.vmem [resolvable:$true] %s776_s1 }
  0xe5   : > { %s1467_s16 = scalar_lea.hbm %s1522_s7, %s985_s0  ;;  %s735_s12 = scalar_lea.sflag [#allocation7], %s1379_s23 }
  0xe6   : > { %s1128_s14 = scalar_lea.vmem %s777_s1, 256  ;;  %s1222_s21 = smov [#allocation6]  }
  0xe7   : > { %p1129_p13 = scmp.ne.s32.totalorder %s777_s1, %s1128_s14  ;;  %s1132_s2 = sshll.u32 %s1222_s21, 4  ;;  %s1133_s2 = int_to_ptr.vmem [resolvable:$false] %s1132_s2 }
  0xe8   : > { %s1134_s3 = scalar_lea.vmem %s1133_s2, 512  ;;  %p1135_p4 = scmp.lt.s32.totalorder %s777_s1, %s1133_s2 }
  0xe9   : > { %p1130_p3 = pnand %p1129_p13, %p1541_p11  ;;  %p1136_p10 = scmp.lt.s32.totalorder %s1134_s3, %s1128_s14 }
  0xeb   : > { %p1131_p6 = pneg %p1130_p3  ;;  %p1137_p12 = por %p1136_p10, %p1135_p4 }
  0xed   : > { %p1138_p1 = pnand %p1137_p12, %p1131_p6 }
  0xef   : > { %1141 = shalt.err (!%p1138_p1)
}
  0xf0   : > { %s1142_s30 = scalar_lea.hbm %s1467_s16, 256  ;;  %s1146_s26 = scalar_lea.hbm %s1522_s7, 512 }
  0xf1   : > { %p1143_p2 = scmp.ne.s32.totalorder %s1467_s16, %s1142_s30  ;;  %p1147_p9 = scmp.lt.u32.totalorder %s1467_s16, %s1522_s7 }
  0xf2   : > { %p1148_p0 = scmp.lt.u32.totalorder %s1146_s26, %s1142_s30  ;;  %p1150_p13 = scmp.lt.u32.totalorder %s1142_s30, %s1467_s16 }
  0xf3   : > { %p1144_p5 = pnand %p1143_p2, %p1541_p11 }
  0xf4   : > { %p1149_p7 = por %p1148_p0, %p1147_p9 }
  0xf5   : > { %p1145_p8 = pneg %p1144_p5 }
  0xf6   : > { %p1151_p3 = por %p1150_p13, %p1149_p7 }
  0xf8   : > { %p1152_p6 = pnand %p1151_p3, %p1145_p8 }
  0xfa   : > { %1155 = shalt.err (!%p1152_p6)
}
  0xfb   : > { %991 = dma.vmem_to_hbm [thread:$0]  (%p1541_p11), %s777_s1, 256, %s1467_s16, %s735_s12   ;;  %v723_v54 = vpop.permute.xlu1 %722 }
  0xfc   : > { %s1542_s3 = sshll.u32 %s1409_s22, 4 }
  0xfd   : > { %s413_s17 = scalar_lea.vmem %s1523_s8, %s1542_s3 }
 0x1a5   : > { %v633_v49 = vpop.f32.mrb[0].mxu1 }
 0x1a6   : > { %v635_v50 = vpop.f32.mrb[1].mxu1 }
 0x1a9   : > { %v714_v51 = vpop.f32.mrb[0].mxu0 }
 0x1aa   : > { %v715_v52 = vadd.f32 %v714_v51, %v633_v49  ;;  %v716_v53 = vpop.f32.mrb[1].mxu0 }
 0x1ab   : > { %v717_v55 = vadd.f32 %v716_v53, %v635_v50 }
 0x1ac   : > { %v725_v56 = vadd.f32 %v723_v54, %v715_v52 }
 0x1ad   : > { %v726_v57 = vadd.f32 %v723_v54, %v717_v55 }
 0x1ae   : > { %727 = vst [vmem:[%s413_s17] sm:$0x1f] %v725_v56 }
 0x1af   : > { %728 = vst [vmem:[%s413_s17 + $0x8] sm:$0x1f] %v726_v57 }
 0x1b0 PF: > { %s792_s18 = sand.u32 1, %s1194_s27   ;;  %p1543_p11 = scmp.ne.s32.totalorder %s1533_s20, 0 }
 0x1b1   : > { %p1544_p4 = scmp.ge.s32.totalorder %s1214_s10, 2  ;;  %s793_s1 = scalar_lea.sflag [#allocation4], %s792_s18 }
 0x1b3   : > { %p999_p10 = pnand %p1544_p4, %p1543_p11 }
 0x1b5   : > { %1185 = dma.done.wait (!%p999_p10), %s793_s1, 128  }
 0x1b6   : > { %1187 = vsyncadd (!%p999_p10), %s793_s1, 4294967168  ;;  %s802_s22 = scalar_lea.sflag [#allocation7], %s792_s18 }
 0x1b7   : > { %1189 = dma.done.wait (!%p999_p10), %s802_s22, 256  }
 0x1b8   : > { %1191 = vsyncadd (!%p999_p10), %s802_s22, 4294967040  ;;  %s28_s10 = sadd.s32 1, %s1214_s10   ;;  %s1545_s27 = smov %s1198_s28 }
 0x1b9   : > { %p25_p12 = scmp.ge.s32.totalorder %s28_s10, 4   ;;  %s1546_s28 = smov %s1202_s29 }
 0x1ba   : > { %s1547_s29 = smov %s1324_s19  ;;  %s1548_s30 = smov %s1210_s9 }
 0x1bb   : > { %s1549_s9 = smov %s1551_s13  ;;  %27 = sbr.rel (!%p25_p12) target bundleno = 13 (0xd), region = 121 }
 0x1c2   :  { %819 = vsyncpa [#allocation3], 1 }
 0x1c3   :  { %821 = vsyncpa [#allocation3 + $0x1], 1 }
 0x1c4   :  { %822 = vsyncpa [#allocation4], 1 }
 0x1c5   :  { %824 = vsyncpa [#allocation4 + $0x1], 1 }
 0x1c6   :  { %825 = vsyncpa [#allocation7], 1 }
 0x1c7   :  { %827 = vsyncpa [#allocation7 + $0x1], 1 }

</bundles_post_ra>
